<compile_context>
chip_gen: v7x
topology: tpu7x:2x2x1
jax: 0.10.0
libtpu: 0.0.40
codegen_flags: <defaults>
</compile_context>

<pallas_src>
import functools

import jax
import jax.numpy as jnp
import numpy as np
from jax.experimental import pallas as pl
from jax.experimental.pallas import tpu as pltpu


def _round_up(x: int, m: int) -> int:
    return (x + m - 1) // m * m


def _cdiv(a: int, b: int) -> int:
    return (a + b - 1) // b


def _ressl_kernel(q_ref, k_ref, out_ref, *, inv_t_student, inv_t_teacher,
                  n_valid_rows, block_rows, mask_rows):
    # All math in f32 regardless of input dtype (bf16 inputs halve HBM traffic).
    q = q_ref[...].astype(jnp.float32) * inv_t_student
    k = k_ref[...].astype(jnp.float32) * inv_t_teacher

    # Student side: only q_shift and log(q_sum) are needed; log_p_s is never
    # materialized as a (TM, K) array.
    q_shift = q - jnp.max(q, axis=1, keepdims=True)
    q_sum = jnp.sum(jnp.exp(q_shift), axis=1, keepdims=True)
    log_q_sum = jnp.log(q_sum)

    # Teacher softmax, factored KL row-sum (no p_t materialization, no where-guard:
    # if exp underflows, k_exp is exactly 0 and the term vanishes, matching the
    # reference's p_t > 0 guard; k_sum >= 1 always):
    #   sum_j p_t*(log p_t - log p_s)
    #     = (1/k_sum) * sum_j k_exp*(k_shift - q_shift) + log(q_sum) - log(k_sum)
    k_shift = k - jnp.max(k, axis=1, keepdims=True)
    k_exp = jnp.exp(k_shift)
    k_sum = jnp.sum(k_exp, axis=1, keepdims=True)
    cross = jnp.sum(k_exp * (k_shift - q_shift), axis=1, keepdims=True)
    # Exact per-row divide (do NOT replace with approx reciprocal).
    row_kl = cross / k_sum + log_q_sum - jnp.log(k_sum)  # (TM, 1)

    if mask_rows:
        # Boundary block: rows past the true batch size hold unspecified data.
        # A select (jnp.where) discards any NaN/Inf they may have produced.
        row0 = pl.program_id(0) * block_rows
        row_ids = row0 + jax.lax.broadcasted_iota(jnp.int32, row_kl.shape, 0)
        row_kl = jnp.where(row_ids < n_valid_rows, row_kl, 0.0)

    partial = jnp.sum(row_kl)  # per-tile scalar
    # Lane-dense, fully aligned (1, 8, 128) store; wrapper reads [:, 0, 0].
    out_ref[...] = jnp.zeros_like(out_ref) + partial


def ressl_loss_v2(logits_q, logits_k, qk=None, T_student=0.1, T_teacher=0.04,
                  block_rows=None):
    """Pallas implementation of ResslLossV2.forward. `qk` is unused (parity with ref)."""
    del qk  # unused by the reference forward pass
    assert logits_q.shape == logits_k.shape and logits_q.ndim == 2
    n, kdim = logits_q.shape
    itemsize = jnp.dtype(logits_q.dtype).itemsize
    # Sublane packing: 8 rows/vreg for 4-byte dtypes, 16 for bf16, 32 for 1-byte.
    sublane = max(8, 32 // itemsize)

    if block_rows is None:
        # ~2 MiB of f32 intermediates per (TM, K) block keeps double-buffered inputs
        # plus live f32 temporaries well under v7x's 64 MiB physical VMEM.
        tm = max(sublane, (2 * 1024 * 1024) // (kdim * 4) // sublane * sublane)
        # Keep the grid >= ~8 steps so the input DMA pipeline has something to
        # overlap and v7x's two TensorCores both receive tiles.
        tm = min(tm, max(sublane, _round_up(_cdiv(n, 8), sublane)))
    else:
        tm = max(sublane, _round_up(int(block_rows), sublane))

    if tm >= n:
        tm = n  # single block spanning the full row extent (always a legal block shape)

    num_tiles = _cdiv(n, tm)
    mask_rows = (n % tm) != 0  # compile the row mask only when boundary rows exist

    kernel = functools.partial(
        _ressl_kernel,
        inv_t_student=1.0 / float(T_student),
        inv_t_teacher=1.0 / float(T_teacher),
        n_valid_rows=n,
        block_rows=tm,
        mask_rows=mask_rows,
    )

    cost = pl.CostEstimate(
        flops=10 * n * kdim,
        transcendentals=2 * n * kdim,
        bytes_accessed=2 * n * kdim * itemsize + num_tiles * 8 * 128 * 4,
    )

    partials = pl.pallas_call(
        kernel,
        out_shape=jax.ShapeDtypeStruct((num_tiles, 8, 128), jnp.float32),
        grid=(num_tiles,),
        in_specs=[
            pl.BlockSpec((tm, kdim), lambda i: (i, 0)),
            pl.BlockSpec((tm, kdim), lambda i: (i, 0)),
        ],
        out_specs=pl.BlockSpec((1, 8, 128), lambda i: (i, 0, 0)),
        compiler_params=pltpu.CompilerParams(
            dimension_semantics=("parallel",),
            vmem_limit_bytes=40 * 1024 * 1024,
        ),
        cost_estimate=cost,
    )(logits_q, logits_k)

    # Finish the mean in the wrapper (tiny reduction over num_tiles partials).
    # Matches KLDivLoss(reduction='mean'): divide by N*K (not 'batchmean').
    return jnp.sum(partials[:, 0, 0]) / jnp.float32(n * kdim)


def _ressl_loss_ref(logits_q, logits_k, T_student=0.1, T_teacher=0.04):
    log_p_s = jax.nn.log_softmax(logits_q.astype(jnp.float32) / T_student, axis=1)
    p_t = jax.nn.softmax(logits_k.astype(jnp.float32) / T_teacher, axis=1)
    pointwise = jnp.where(p_t > 0.0, p_t * (jnp.log(p_t) - log_p_s), 0.0)
    return jnp.mean(pointwise)


if __name__ == "__main__":
    key = jax.random.PRNGKey(0)
    kq, kk, kqk = jax.random.split(key, 3)

    # Case 1: small lane-aligned batch, single tile. N=8, K=128, f32.
    n, kdim = 8, 128
    logits_q = jax.random.normal(kq, (n, kdim), dtype=jnp.float32)
    logits_k = jax.random.normal(kk, (n, kdim), dtype=jnp.float32)
    qk = jax.random.normal(kqk, (n, n), dtype=jnp.float32)  # unused by forward

    loss = jax.block_until_ready(ressl_loss_v2(logits_q, logits_k, qk))
    ref = jax.block_until_ready(_ressl_loss_ref(logits_q, logits_k))
    assert np.isfinite(np.asarray(loss)), "non-finite loss"
    np.testing.assert_allclose(np.asarray(loss), np.asarray(ref), rtol=1e-5, atol=1e-6)

    # Case 2: ragged batch, multi-tile grid, NO padding (boundary block is masked).
    n2, k2 = 12, 256
    lq2 = jax.random.normal(jax.random.fold_in(kq, 1), (n2, k2), dtype=jnp.float32)
    lk2 = jax.random.normal(jax.random.fold_in(kk, 1), (n2, k2), dtype=jnp.float32)
    loss2 = jax.block_until_ready(ressl_loss_v2(lq2, lk2, None, 0.1, 0.04, block_rows=8))
    ref2 = jax.block_until_ready(_ressl_loss_ref(lq2, lk2))
    np.testing.assert_allclose(np.asarray(loss2), np.asarray(ref2), rtol=1e-5, atol=1e-6)

    # Case 3: bf16 inputs at the call boundary (halves HBM traffic); f32 math in-kernel.
    lq3 = logits_q.astype(jnp.bfloat16)
    lk3 = logits_k.astype(jnp.bfloat16)
    loss3 = jax.block_until_ready(ressl_loss_v2(lq3, lk3, qk))
    ref3 = jax.block_until_ready(_ressl_loss_ref(lq3, lk3))
    np.testing.assert_allclose(np.asarray(loss3), np.asarray(ref3), rtol=1e-5, atol=1e-6)

    # Case 4: default heuristic picks a deep grid (>= ~8 steps) + masked boundary tile.
    n4, k4 = 100, 384
    lq4 = jax.random.normal(jax.random.fold_in(kq, 2), (n4, k4), dtype=jnp.float32)
    lk4 = jax.random.normal(jax.random.fold_in(kk, 2), (n4, k4), dtype=jnp.float32)
    loss4 = jax.block_until_ready(ressl_loss_v2(lq4, lk4, None))
    ref4 = jax.block_until_ready(_ressl_loss_ref(lq4, lk4))
    np.testing.assert_allclose(np.asarray(loss4), np.asarray(ref4), rtol=1e-5, atol=1e-6)

    print("KERNEL_OK")
</pallas_src>

<mosaic_0001>
module attributes {stable_mosaic.version = 11 : i64} {
  func.func @_ressl_kernel(%arg0: i32, %arg1: memref<8x128xf32, #tpu.memory_space<vmem>>, %arg2: memref<8x128xf32, #tpu.memory_space<vmem>>, %arg3: memref<1x8x128xf32, #tpu.memory_space<vmem>>) attributes {dimension_semantics = [#tpu.dimension_semantics<parallel>], iteration_bounds = array<i64: 1>, scalar_prefetch = 0 : i64, scratch_operands = 0 : i64, tpu.core_type = #tpu.core_type<tc>, window_params = [{transform_indices = @transform_0, window_bounds = array<i64: 8, 128>}, {transform_indices = @transform_1, window_bounds = array<i64: 8, 128>}, {transform_indices = @transform_2, window_bounds = array<i64: 1, 8, 128>}]} {
    %c0 = arith.constant 0 : index
    %c0_0 = arith.constant 0 : index
    %0 = vector.load %arg1[%c0, %c0_0] : memref<8x128xf32, #tpu.memory_space<vmem>>, vector<8x128xf32>
    %cst = arith.constant 1.000000e+01 : f32
    %1 = vector.broadcast %cst : f32 to vector<8x128xf32>
    %2 = arith.mulf %0, %1 : vector<8x128xf32>
    %c0_1 = arith.constant 0 : index
    %c0_2 = arith.constant 0 : index
    %3 = vector.load %arg2[%c0_1, %c0_2] : memref<8x128xf32, #tpu.memory_space<vmem>>, vector<8x128xf32>
    %cst_3 = arith.constant 2.500000e+01 : f32
    %4 = vector.broadcast %cst_3 : f32 to vector<8x128xf32>
    %5 = arith.mulf %3, %4 : vector<8x128xf32>
    %cst_4 = arith.constant dense<0xFF800000> : vector<8xf32>
    %6 = vector.multi_reduction <maximumf>, %2, %cst_4 [1] : vector<8x128xf32> to vector<8xf32>
    %7 = vector.shape_cast %6 : vector<8xf32> to vector<8x1xf32>
    %8 = vector.broadcast %7 : vector<8x1xf32> to vector<8x128xf32>
    %9 = arith.subf %2, %8 : vector<8x128xf32>
    %10 = math.exp %9 : vector<8x128xf32>
    %cst_5 = arith.constant dense<0.000000e+00> : vector<8xf32>
    %11 = vector.multi_reduction <add>, %10, %cst_5 [1] : vector<8x128xf32> to vector<8xf32>
    %12 = vector.shape_cast %11 : vector<8xf32> to vector<8x1xf32>
    %13 = math.log %12 : vector<8x1xf32>
    %cst_6 = arith.constant dense<0xFF800000> : vector<8xf32>
    %14 = vector.multi_reduction <maximumf>, %5, %cst_6 [1] : vector<8x128xf32> to vector<8xf32>
    %15 = vector.shape_cast %14 : vector<8xf32> to vector<8x1xf32>
    %16 = vector.broadcast %15 : vector<8x1xf32> to vector<8x128xf32>
    %17 = arith.subf %5, %16 : vector<8x128xf32>
    %18 = math.exp %17 : vector<8x128xf32>
    %cst_7 = arith.constant dense<0.000000e+00> : vector<8xf32>
    %19 = vector.multi_reduction <add>, %18, %cst_7 [1] : vector<8x128xf32> to vector<8xf32>
    %20 = vector.shape_cast %19 : vector<8xf32> to vector<8x1xf32>
    %21 = arith.subf %17, %9 : vector<8x128xf32>
    %22 = arith.mulf %18, %21 : vector<8x128xf32>
    %cst_8 = arith.constant dense<0.000000e+00> : vector<8xf32>
    %23 = vector.multi_reduction <add>, %22, %cst_8 [1] : vector<8x128xf32> to vector<8xf32>
    %24 = vector.shape_cast %23 : vector<8xf32> to vector<8x1xf32>
    %25 = arith.divf %24, %20 : vector<8x1xf32>
    %26 = arith.addf %25, %13 : vector<8x1xf32>
    %27 = math.log %20 : vector<8x1xf32>
    %28 = arith.subf %26, %27 : vector<8x1xf32>
    %29 = vector.shape_cast %28 : vector<8x1xf32> to vector<1x8x1xf32>
    %cst_9 = arith.constant dense<0.000000e+00> : vector<1xf32>
    %30 = vector.multi_reduction <add>, %29, %cst_9 [1, 2] : vector<1x8x1xf32> to vector<1xf32>
    %31 = vector.shape_cast %30 : vector<1xf32> to vector<1x1x1xf32>
    %32 = vector.extract %31[0, 0, 0] : f32 from vector<1x1x1xf32>
    %cst_10 = arith.constant 0.000000e+00 : f32
    %33 = vector.broadcast %cst_10 : f32 to vector<1x8x128xf32>
    %34 = vector.broadcast %32 : f32 to vector<1x8x128xf32>
    %35 = arith.addf %33, %34 : vector<1x8x128xf32>
    %c0_11 = arith.constant 0 : index
    %c0_12 = arith.constant 0 : index
    %c0_13 = arith.constant 0 : index
    %36 = vector.load %arg3[%c0_11, %c0_12, %c0_13] : memref<1x8x128xf32, #tpu.memory_space<vmem>>, vector<1x8x128xf32>
    tpu.vector_store %arg3[%c0_11, %c0_12, %c0_13], %35 {strides = array<i32>} : memref<1x8x128xf32, #tpu.memory_space<vmem>>, vector<1x8x128xf32>,
    return
  }
  func.func @transform_0(%arg0: i32) -> (i32, i32) {
    %c0_i32 = arith.constant 0 : i32
    %c0_i32_0 = arith.constant 0 : i32
    return %arg0, %c0_i32 : i32, i32
  }
  func.func @transform_1(%arg0: i32) -> (i32, i32) {
    %c0_i32 = arith.constant 0 : i32
    %c0_i32_0 = arith.constant 0 : i32
    return %arg0, %c0_i32 : i32, i32
  }
  func.func @transform_2(%arg0: i32) -> (i32, i32, i32) {
    %c0_i32 = arith.constant 0 : i32
    %c0_i32_0 = arith.constant 0 : i32
    %c0_i32_1 = arith.constant 0 : i32
    return %arg0, %c0_i32, %c0_i32_0 : i32, i32, i32
  }
}

</mosaic_0001>

<bundles_post_ra>
// kernel: tpu_custom_call.1
= control target key start
LH: loop header
LB: loop body
LE: loop exit
PB: predicated region body
PF: predicated region fallthrough
CT: control target
= control target key end

     0   :  { %7 = vsyncpa [#allocation3], 0  ;;  %s237_s0 = inlined_call_operand.hbm [shape: f32[8,128], index: 0, kind: input, shape index: {}]   ;;  %s238_s1 = inlined_call_operand.hbm [shape: f32[8,128], index: 1, kind: input, shape index: {}]   ;;  %s239_s2 = inlined_call_operand.hbm [shape: f32[1,8,128], index: 2, kind: output, shape index: {}]  }
   0x1   :  { %8 = vsyncpa [#allocation6], 0 }
   0x2   :  { %9 = vsyncpa [#allocation4], 0  ;;  %s183_s9 = smov [#allocation2]   ;;  %s184_s11 = smov [#allocation5]  }
   0x3   :  { %s16_s10 = sshll.u32 %s183_s9, 4  ;;  %s26_s12 = sshll.u32 %s184_s11, 4  ;;  %s17_s10 = int_to_ptr.vmem [resolvable:$true] %s16_s10  ;;  %s27_s12 = int_to_ptr.vmem [resolvable:$true] %s26_s12 }
   0x4   :  { %s111_s15 = scalar_lea.hbm %s237_s0, 128 }
   0x5   :  { %p112_p0 = scmp.ne.s32.totalorder %s237_s0, %s111_s15  ;;  %p115_p1 = scmp.lt.u32.totalorder %s111_s15, %s237_s0 }
   0x7   :  { %p117_p2 = pnand %p115_p1, %p112_p0 }
   0x9   :  { %120 = shalt.err (!%p117_p2)
}
   0xa   :  { %s121_s20 = scalar_lea.vmem %s17_s10, 128  ;;  %p126_p4 = scmp.lt.s32.totalorder %s17_s10, %s17_s10 }
   0xb   :  { %p122_p3 = scmp.ne.s32.totalorder %s17_s10, %s121_s20  ;;  %p127_p5 = scmp.lt.s32.totalorder %s121_s20, %s121_s20 }
   0xd   :  { %p128_p6 = por %p127_p5, %p126_p4 }
   0xf   :  { %p129_p7 = pnand %p128_p6, %p122_p3 }
  0x11   :  { %132 = shalt.err (!%p129_p7)
}
  0x12   :  { %19 = dma.hbm_to_vmem [thread:$0]  %s237_s0, 128, %s17_s10, [#allocation3]  }
  0x13   :  { %s133_s25 = scalar_lea.hbm %s238_s1, 128 }
  0x14   :  { %p134_p8 = scmp.ne.s32.totalorder %s238_s1, %s133_s25  ;;  %p137_p9 = scmp.lt.u32.totalorder %s133_s25, %s238_s1 }
  0x16   :  { %p139_p10 = pnand %p137_p9, %p134_p8 }
  0x18   :  { %142 = shalt.err (!%p139_p10)
}
  0x19   :  { %s143_s30 = scalar_lea.vmem %s27_s12, 128  ;;  %p148_p12 = scmp.lt.s32.totalorder %s27_s12, %s27_s12 }
  0x1a   :  { %p144_p11 = scmp.ne.s32.totalorder %s27_s12, %s143_s30  ;;  %p149_p13 = scmp.lt.s32.totalorder %s143_s30, %s143_s30 }
  0x1c   :  { %p150_p0 = por %p149_p13, %p148_p12 }
  0x1e   :  { %p151_p1 = pnand %p150_p0, %p144_p11 }
  0x20   :  { %154 = shalt.err (!%p151_p1)
}
  0x21   :  { %29 = dma.hbm_to_vmem [thread:$0]  %s238_s1, 128, %s27_s12, [#allocation6]  }
  0x22   :  { %177 = dma.done.wait [#allocation3], 128  }
  0x23   :  { %178 = vsyncadd [#allocation3], 4294967168 }
  0x24   :  { %179 = dma.done.wait [#allocation6], 128  }
  0x25   :  { %180 = vsyncadd [#allocation6], 4294967168  ;;  %v36_v0 = vld [vmem:[#allocation2] sm:$0xff]  ;;  %v38_v1 = vld [vmem:[#allocation5] sm:$0xff]  ;;  %vm66_vm0 = vcmask 7168   ;;  %s185_s1 = smov [#allocation7]  }
  0x26   :  { %v37_v2 = vmul.f32 10.0, %v36_v0  ;;  %v39_v3 = vmul.f32 25.0, %v38_v1  ;;  %s86_s4 = sshll.u32 %s185_s1, 4  ;;  %s87_s4 = int_to_ptr.vmem [resolvable:$true] %s86_s4 }
  0x27   :  { %s155_s6 = scalar_lea.vmem %s87_s4, 128  ;;  %p160_p3 = scmp.lt.s32.totalorder %s87_s4, %s87_s4 }
  0x28   :  { %40 = vmax.xlane.f32.xlu0 %v37_v2  ;;  %p156_p2 = scmp.ne.s32.totalorder %s87_s4, %s155_s6  ;;  %p161_p4 = scmp.lt.s32.totalorder %s155_s6, %s155_s6 }
  0x2a   :  { %p162_p5 = por %p161_p4, %p160_p3 }
  0x2c   :  { %49 = vmax.xlane.f32.xlu0 %v39_v3  ;;  %p163_p6 = pnand %p162_p5, %p156_p2 }
  0xb5   :  { %v41_v4 = vpop.xlane.xlu0 %40 }
  0xb6   :  { %v42_v5 = vsub.f32 %v37_v2, %v41_v4 }
  0xb8   :  { %v43_v6 = vmul.f32 1.442695, %v42_v5 }
  0xb9   :  { %v50_v7 = vpop.xlane.xlu0 %49 }
  0xba   :  { %v51_v8 = vsub.f32 %v39_v3, %v50_v7  ;;  %101 = vpow2.f32 %v43_v6 }
  0xbc   :  { %v52_v9 = vmul.f32 1.442695, %v51_v8  ;;  %v56_v11 = vsub.f32 %v51_v8, %v42_v5 }
  0xbe   :  { %103 = vpow2.f32 %v52_v9 }
  0xc4   :  { %v102_v10 = vpop.eup %101 }
  0xc5   :  { %45 = vadd.xlane.f32.xlu1 %v102_v10 }
  0xc8   :  { %v104_v12 = vpop.eup %103 }
  0xc9   :  { %54 = vadd.xlane.f32.xlu1 %v104_v12  ;;  %v57_v13 = vmul.f32 %v104_v12, %v56_v11 }
  0xcb   :  { %58 = vadd.xlane.f32.xlu0 %v57_v13 }
 0x152   :  { %v46_v14 = vpop.xlane.xlu1 %45 }
 0x153   :  { %105 = vlog2.f32 %v46_v14 }
 0x156   :  { %v55_v15 = vpop.xlane.xlu1 %54 }
 0x157   :  { %107 = vrcp.f32 %v55_v15 }
 0x158   :  { %109 = vlog2.f32 %v55_v15  ;;  %v59_v18 = vpop.xlane.xlu0 %58 }
 0x15d   :  { %v106_v16 = vpop.eup %105 }
 0x15e   :  { %v48_v20 = vmul.f32 0.6931472, %v106_v16 }
 0x161   :  { %v108_v17 = vpop.eup %107 }
 0x162   :  { %v110_v19 = vpop.eup %109  ;;  %v61_v21 = vmul.f32 %v108_v17, %v59_v18 }
 0x163   :  { %v64_v23 = vmul.f32 0.6931472, %v110_v19 }
 0x164   :  { %v62_v22 = vadd.f32 %v61_v21, %v48_v20 }
 0x166   :  { %v65_v24 = vsub.f32 %v62_v22, %v64_v23 }
 0x168   :  { %v67_v25 = vsel %vm66_vm0, %v65_v24, 0.0 }
 0x169   :  { %68 = vadd.xlane.f32.xlu1 %v67_v25 }
 0x1f6   :  { %v69_v26 = vpop.xlane.xlu1 %68 }
 0x1f7   :  { %v70_v27 = vrot.slane %v69_v26, 4 }
 0x1f9   :  { %v71_v28 = vadd.f32 %v70_v27, %v69_v26 }
 0x1fb   :  { %v72_v29 = vrot.slane %v71_v28, 2 }
 0x1fd   :  { %v73_v30 = vadd.f32 %v72_v29, %v71_v28 }
 0x1ff   :  { %v74_v31 = vrot.slane %v73_v30, 1 }
 0x201   :  { %v75_v32 = vadd.f32 %v74_v31, %v73_v30 }
 0x203   :  { %96 = vpush %v75_v32 }
 0x234   :  { %s97_s5 = spop %96 }
 0x235   :  { %v77_v33 = vstv %s97_s5 }
 0x236   :  { %79 = vst [vmem:[#allocation7] sm:$0xff] %v77_v33 }
 0x237   :  { %166 = shalt.err (!%p163_p6)
}
 0x238   :  { %s167_s9 = scalar_lea.hbm %s239_s2, 128 }
 0x239   :  { %p168_p7 = scmp.ne.s32.totalorder %s239_s2, %s167_s9  ;;  %p171_p8 = scmp.lt.u32.totalorder %s167_s9, %s239_s2 }
 0x23b   :  { %p173_p9 = pnand %p171_p8, %p168_p7 }
 0x23d   :  { %176 = shalt.err (!%p173_p9)
}
 0x23e   :  { %89 = dma.vmem_to_hbm [thread:$0]  %s87_s4, 128, %s239_s2, [#allocation4]  }
 0x23f   :  { %181 = dma.done.wait [#allocation4], 128  }
 0x240   :  { %182 = vsyncadd [#allocation4], 4294967168 }
 0x241   :  { %93 = vsyncpa [#allocation3], 1 }
 0x242   :  { %94 = vsyncpa [#allocation6], 1 }
 0x243   :  { %95 = vsyncpa [#allocation4], 1 }

</bundles_post_ra>
